<compile_context>
chip_gen: v7x
topology: tpu7x:2x2x1
jax: 0.10.0
libtpu: 0.0.40
codegen_flags: <defaults>
</compile_context>

<pallas_src>
import jax
import jax.numpy as jnp
from jax.experimental import pallas as pl
from jax.experimental.pallas import tpu as pltpu

IN_DIM = 20
HIDDEN_DIM = 256
OUT_DIM = 10
PAD_OUT = 128          # lane-dense padded width for the second matmul
DEFAULT_TM = 2048      # rows per grid step (amortizes ~0.35 us/step overhead)


def mlp_kernel(x_ref, w1_ref, b1_ref, w2_ref, b2_ref, o_ref):
    # Layer 1: bf16 operands on the MXU, f32 accumulation.
    x = x_ref[...].astype(jnp.bfloat16)
    h = jnp.dot(x, w1_ref[...], preferred_element_type=jnp.float32)
    # Bias + ReLU in f32 on the VPU (v5e VPU has no bf16 lanes).
    h = jnp.maximum(h + b1_ref[...], 0.0)
    # Layer 2: hidden cast to bf16 for the MXU; W2/b2 zero-padded to 128 lanes
    # so the compute tile is lane-dense. f32 accumulation.
    y = jnp.dot(h.astype(jnp.bfloat16), w2_ref[...],
                preferred_element_type=jnp.float32)
    y = y + b2_ref[...]
    # Store only the real 10 output columns (HBM writeback stays narrow).
    o_ref[...] = y[:, :OUT_DIM].astype(o_ref.dtype)


def _round_up(n, m):
    return ((n + m - 1) // m) * m


def mlp_forward(x, w1, b1, w2, b2, *, tile_m=DEFAULT_TM):
    """x: (B, 20) float32. Returns (B, 10) float32.

    Weights stored transposed: w1 (20, 256), b1 (1, 256), w2 (256, 10),
    b2 (1, 10).
    """
    B = x.shape[0]

    # Effective row tile: multiple of 8 (sublane), no bigger than needed.
    tm = min(tile_m, _round_up(B, 8))
    tm = max(8, _round_up(tm, 8))
    b_pad = _round_up(B, tm)

    # Pad the batch only if the grid would not divide evenly (x stays f32;
    # the bf16 cast happens in-kernel, avoiding an extra wrapper memory pass).
    x_p = x if b_pad == B else jnp.pad(x, ((0, b_pad - B), (0, 0)))

    # Weights are tiny: cast once in the wrapper (not per grid step).
    w1_b = w1.astype(jnp.bfloat16)
    b1_f = b1.astype(jnp.float32).reshape(1, HIDDEN_DIM)
    # Zero-pad W2/b2 to a lane-dense 128-wide compute tile (VMEM-only cost).
    w2_p = jnp.zeros((HIDDEN_DIM, PAD_OUT), jnp.bfloat16).at[:, :OUT_DIM].set(
        w2.astype(jnp.bfloat16))
    b2_p = jnp.zeros((1, PAD_OUT), jnp.float32).at[:, :OUT_DIM].set(
        b2.astype(jnp.float32).reshape(1, OUT_DIM))

    grid = (b_pad // tm,)

    out = pl.pallas_call(
        mlp_kernel,
        out_shape=jax.ShapeDtypeStruct((b_pad, OUT_DIM), jnp.float32),
        grid=grid,
        in_specs=[
            pl.BlockSpec((tm, IN_DIM), lambda i: (i, 0)),          # x rows
            pl.BlockSpec((IN_DIM, HIDDEN_DIM), lambda i: (0, 0)),  # W1 resident
            pl.BlockSpec((1, HIDDEN_DIM), lambda i: (0, 0)),       # b1 resident
            pl.BlockSpec((HIDDEN_DIM, PAD_OUT), lambda i: (0, 0)), # W2 resident
            pl.BlockSpec((1, PAD_OUT), lambda i: (0, 0)),          # b2 resident
        ],
        out_specs=pl.BlockSpec((tm, OUT_DIM), lambda i: (i, 0)),
        compiler_params=pltpu.CompilerParams(
            dimension_semantics=("parallel",),
            vmem_limit_bytes=48 << 20,
        ),
    )(x_p, w1_b, b1_f, w2_p, b2_p)

    return out[:B]


# Jitted entry (tile_m is a static trace-time parameter).
mlp_forward_jit = jax.jit(mlp_forward, static_argnames=("tile_m",))


def init_params(key):
    """Deterministic init matching nn.Linear shapes (stored transposed)."""
    k1, k2, k3, k4 = jax.random.split(key, 4)
    # nn.Linear(20, 256): weight (256, 20), bias (256,) -> W1 stored (20, 256)
    bound1 = 1.0 / jnp.sqrt(IN_DIM)
    w1 = jax.random.uniform(k1, (IN_DIM, HIDDEN_DIM), jnp.float32, -bound1, bound1)
    b1 = jax.random.uniform(k2, (1, HIDDEN_DIM), jnp.float32, -bound1, bound1)
    # nn.Linear(256, 10): weight (10, 256), bias (10,) -> W2 stored (256, 10)
    bound2 = 1.0 / jnp.sqrt(HIDDEN_DIM)
    w2 = jax.random.uniform(k3, (HIDDEN_DIM, OUT_DIM), jnp.float32, -bound2, bound2)
    b2 = jax.random.uniform(k4, (1, OUT_DIM), jnp.float32, -bound2, bound2)
    return w1, b1, w2, b2


def _reference(x, w1, b1, w2, b2):
    # Mirror the kernel's numerics: bf16 operands, f32 accumulation/epilogue.
    xb = x.astype(jnp.bfloat16).astype(jnp.float32)
    w1b = w1.astype(jnp.bfloat16).astype(jnp.float32)
    w2b = w2.astype(jnp.bfloat16).astype(jnp.float32)
    h = jnp.maximum(xb @ w1b + b1, 0.0)
    hb = h.astype(jnp.bfloat16).astype(jnp.float32)
    return hb @ w2b + b2


if __name__ == "__main__":
    key = jax.random.PRNGKey(0)
    kx, kp, kx2 = jax.random.split(key, 3)

    w1, b1, w2, b2 = init_params(kp)

    # Small batch (launch-overhead bound, but verifies correctness).
    B = 8
    x = jax.random.normal(kx, (B, IN_DIM), jnp.float32)
    out = jax.block_until_ready(mlp_forward_jit(x, w1, b1, w2, b2))

    ref_bf16 = _reference(x, w1, b1, w2, b2)
    ref_f32 = jnp.maximum(x @ w1 + b1, 0.0) @ w2 + b2
    assert out.shape == (B, OUT_DIM)
    assert jnp.allclose(out, ref_bf16, atol=1e-3, rtol=1e-3)
    assert jnp.allclose(out, ref_f32, atol=5e-2, rtol=5e-2)

    # Second check: non-multiple-of-tile batch exercises the grid + padding.
    B2 = 100
    x2 = jax.random.normal(kx2, (B2, IN_DIM), jnp.float32)
    out2 = jax.block_until_ready(
        mlp_forward_jit(x2, w1, b1, w2, b2, tile_m=32))
    ref2 = _reference(x2, w1, b1, w2, b2)
    assert out2.shape == (B2, OUT_DIM)
    assert jnp.allclose(out2, ref2, atol=1e-3, rtol=1e-3)

    print("KERNEL_OK")
</pallas_src>

<mosaic_0001>
module attributes {stable_mosaic.version = 11 : i64} {
  func.func @mlp_kernel(%arg0: i32, %arg1: memref<8x20xf32, #tpu.memory_space<vmem>>, %arg2: memref<20x256xbf16, #tpu.memory_space<vmem>>, %arg3: memref<1x256xf32, #tpu.memory_space<vmem>>, %arg4: memref<256x128xbf16, #tpu.memory_space<vmem>>, %arg5: memref<1x128xf32, #tpu.memory_space<vmem>>, %arg6: memref<8x10xf32, #tpu.memory_space<vmem>>) attributes {dimension_semantics = [#tpu.dimension_semantics<parallel>], iteration_bounds = array<i64: 1>, scalar_prefetch = 0 : i64, scratch_operands = 0 : i64, tpu.core_type = #tpu.core_type<tc>, window_params = [{transform_indices = @transform_0, window_bounds = array<i64: 8, 20>}, {pipeline_mode = #tpu.pipeline_mode<synchronous>, transform_indices = @transform_1, window_bounds = array<i64: 20, 256>}, {pipeline_mode = #tpu.pipeline_mode<synchronous>, transform_indices = @transform_2, window_bounds = array<i64: 1, 256>}, {pipeline_mode = #tpu.pipeline_mode<synchronous>, transform_indices = @transform_3, window_bounds = array<i64: 256, 128>}, {pipeline_mode = #tpu.pipeline_mode<synchronous>, transform_indices = @transform_4, window_bounds = array<i64: 1, 128>}, {transform_indices = @transform_5, window_bounds = array<i64: 8, 10>}]} {
    %c0 = arith.constant 0 : index
    %c0_0 = arith.constant 0 : index
    %0 = vector.load %arg1[%c0, %c0_0] : memref<8x20xf32, #tpu.memory_space<vmem>>, vector<8x20xf32>
    %1 = arith.truncf %0 : vector<8x20xf32> to vector<8x20xbf16>
    %c0_1 = arith.constant 0 : index
    %c0_2 = arith.constant 0 : index
    %2 = vector.load %arg2[%c0_1, %c0_2] : memref<20x256xbf16, #tpu.memory_space<vmem>>, vector<20x256xbf16>
    %cst = arith.constant dense<0.000000e+00> : vector<8x256xf32>
    %3 = tpu.matmul %1, %2, %cst {dimension_numbers = #tpu.dot_dimension_numbers<[1], [0], [0], [1], [0, 0, 1, 1], [], []>} : vector<8x20xbf16>, vector<20x256xbf16>, vector<8x256xf32> -> vector<8x256xf32>
    %c0_3 = arith.constant 0 : index
    %c0_4 = arith.constant 0 : index
    %4 = vector.load %arg3[%c0_3, %c0_4] : memref<1x256xf32, #tpu.memory_space<vmem>>, vector<1x256xf32>
    %5 = vector.broadcast %4 : vector<1x256xf32> to vector<8x256xf32>
    %6 = arith.addf %3, %5 : vector<8x256xf32>
    %cst_5 = arith.constant 0.000000e+00 : f32
    %7 = vector.broadcast %cst_5 : f32 to vector<8x256xf32>
    %8 = arith.maximumf %6, %7 : vector<8x256xf32>
    %9 = arith.truncf %8 : vector<8x256xf32> to vector<8x256xbf16>
    %c0_6 = arith.constant 0 : index
    %c0_7 = arith.constant 0 : index
    %10 = vector.load %arg4[%c0_6, %c0_7] : memref<256x128xbf16, #tpu.memory_space<vmem>>, vector<256x128xbf16>
    %cst_8 = arith.constant dense<0.000000e+00> : vector<8x128xf32>
    %11 = tpu.matmul %9, %10, %cst_8 {dimension_numbers = #tpu.dot_dimension_numbers<[1], [0], [0], [1], [0, 0, 1, 1], [], []>} : vector<8x256xbf16>, vector<256x128xbf16>, vector<8x128xf32> -> vector<8x128xf32>
    %c0_9 = arith.constant 0 : index
    %c0_10 = arith.constant 0 : index
    %12 = vector.load %arg5[%c0_9, %c0_10] : memref<1x128xf32, #tpu.memory_space<vmem>>, vector<1x128xf32>
    %13 = vector.broadcast %12 : vector<1x128xf32> to vector<8x128xf32>
    %14 = arith.addf %11, %13 : vector<8x128xf32>
    %15 = vector.extract_strided_slice %14 {offsets = [0, 0], sizes = [8, 10], strides = [1, 1]} : vector<8x128xf32> to vector<8x10xf32>
    %c0_11 = arith.constant 0 : index
    %c0_12 = arith.constant 0 : index
    %16 = vector.load %arg6[%c0_11, %c0_12] : memref<8x10xf32, #tpu.memory_space<vmem>>, vector<8x10xf32>
    tpu.vector_store %arg6[%c0_11, %c0_12], %15 {strides = array<i32>} : memref<8x10xf32, #tpu.memory_space<vmem>>, vector<8x10xf32>,
    return
  }
  func.func @transform_0(%arg0: i32) -> (i32, i32) {
    %c0_i32 = arith.constant 0 : i32
    %c0_i32_0 = arith.constant 0 : i32
    return %arg0, %c0_i32 : i32, i32
  }
  func.func @transform_1(%arg0: i32) -> (i32, i32) {
    %c0_i32 = arith.constant 0 : i32
    %c0_i32_0 = arith.constant 0 : i32
    %c0_i32_1 = arith.constant 0 : i32
    return %c0_i32, %c0_i32_0 : i32, i32
  }
  func.func @transform_2(%arg0: i32) -> (i32, i32) {
    %c0_i32 = arith.constant 0 : i32
    %c0_i32_0 = arith.constant 0 : i32
    %c0_i32_1 = arith.constant 0 : i32
    return %c0_i32, %c0_i32_0 : i32, i32
  }
  func.func @transform_3(%arg0: i32) -> (i32, i32) {
    %c0_i32 = arith.constant 0 : i32
    %c0_i32_0 = arith.constant 0 : i32
    %c0_i32_1 = arith.constant 0 : i32
    return %c0_i32, %c0_i32_0 : i32, i32
  }
  func.func @transform_4(%arg0: i32) -> (i32, i32) {
    %c0_i32 = arith.constant 0 : i32
    %c0_i32_0 = arith.constant 0 : i32
    %c0_i32_1 = arith.constant 0 : i32
    return %c0_i32, %c0_i32_0 : i32, i32
  }
  func.func @transform_5(%arg0: i32) -> (i32, i32) {
    %c0_i32 = arith.constant 0 : i32
    %c0_i32_0 = arith.constant 0 : i32
    return %arg0, %c0_i32 : i32, i32
  }
}

</mosaic_0001>

<bundles_post_ra>
// kernel: mlp_forward.1
= control target key start
LH: loop header
LB: loop body
LE: loop exit
PB: predicated region body
PF: predicated region fallthrough
CT: control target
= control target key end

     0   :  { %vm58_vm0 = vcmask 1041408   ;;  %v393_v3 = vmov 0   ;;  %vm54_vm1 = vcmask 162816   ;;  %s503_s0 = inlined_call_operand.vmem [shape: f32[8,20], index: 0, kind: input, shape index: {}]   ;;  %s504_s1 = inlined_call_operand.vmem [shape: bf16[20,256], index: 1, kind: input, shape index: {}]   ;;  %s505_s2 = inlined_call_operand.vmem [shape: f32[1,256], index: 2, kind: input, shape index: {}]   ;;  %s506_s3 = inlined_call_operand.vmem [shape: bf16[256,128], index: 3, kind: input, shape index: {}]   ;;  %s507_s4 = inlined_call_operand.vmem [shape: f32[1,128], index: 4, kind: input, shape index: {}]   ;;  %s508_s5 = inlined_call_operand.hbm [shape: f32[8,10], index: 5, kind: output, shape index: {}]  }
   0x1   :  { %v348_v0 = vld [vmem:[%s504_s1 + $0x4] ss:$8 sps:$4 sm:$0xff]   ;;  %v350_v1 = vld [vmem:[%s504_s1] ss:$8 sps:$4 sm:$0xff]   ;;  %v26_v2 = vld [vmem:[%s504_s1 + $0x10] sm:$0x33]  ;;  %97 = vmatprep.mubr.bf16.mxu0 %v393_v3 }
   0x2   :  { %v22_v4 = vld [vmem:[%s503_s0] sm:$0xff]  ;;  %65 = vmatprep.subr.bf16.mxu0 %v348_v0  ;;  %v304_v5 = vcombine.high %v26_v2, %v26_v2  ;;  %v303_v6 = vcombine.low %v26_v2, %v26_v2  ;;  %v355_v10 = vld [vmem:[%s506_s3 + $0x48] sm:$0xff]   ;;  %v357_v13 = vld [vmem:[%s506_s3 + $0x50] sm:$0xff]  }
   0x3   :  { %v353_v7 = vld [vmem:[%s506_s3 + $0x40] sm:$0xff]   ;;  %66 = vmatpush1.bf16.msra.mxu0 %v350_v1  ;;  %v356_v11 = vld [vmem:[%s506_s3 + $0x8] sm:$0xff]   ;;  %v23_v12 = vpack.c.bf16 %v22_v4, %v22_v4  ;;  %v358_v14 = vld [vmem:[%s506_s3 + $0x10] sm:$0xff]  }
   0x4   :  { %v354_v8 = vld [vmem:[%s506_s3] sm:$0xff]   ;;  %305 = vmatprep.subr.msk.bf16.mxu0 %vm58_vm0, %v304_v5  ;;  %v60_v9 = vsel %vm58_vm0, %v303_v6, 0  ;;  %324 = vmatprep.subr.bf16.mxu1 %v353_v7  ;;  %v359_v15 = vld [vmem:[%s506_s3 + $0x58] sm:$0xff]  }
   0x5   :  { %325 = vmatpush3.bf16.msra.mxu1 %v354_v8  ;;  %v360_v16 = vld [vmem:[%s506_s3 + $0x18] sm:$0xff]   ;;  %v361_v17 = vld [vmem:[%s506_s3 + $0x60] sm:$0xff]  }
   0x6   :  { %326 = vmatprep.subr.bf16.mxu1 %v355_v10  ;;  %v362_v18 = vld [vmem:[%s506_s3 + $0x20] sm:$0xff]  }
   0x7   :  { %68 = vmatpush1.bf16.msra.mxu0 %v60_v9 }
   0x9   :  { %327 = vmatpush3.bf16.msra.mxu1 %v356_v11 }
   0xa   :  { %306 = vmatmul.mubr.msk.bf16.vlgmr.msra.gmra.mrb[0].mxu0 %vm54_vm1, %v23_v12  ;;  %328 = vmatprep.subr.bf16.mxu1 %v357_v13 }
   0xd   :  { %329 = vmatpush3.bf16.msra.mxu1 %v358_v14 }
   0xe   :  { %330 = vmatprep.subr.bf16.mxu1 %v359_v15 }
  0x11   :  { %331 = vmatpush3.bf16.msra.mxu1 %v360_v16 }
  0x12   :  { %10 = vsyncpa [#allocation3], 0  ;;  %332 = vmatprep.subr.bf16.mxu1 %v361_v17  ;;  %v363_v19 = vld [vmem:[%s506_s3 + $0x68] sm:$0xff]   ;;  %v365_v21 = vld [vmem:[%s506_s3 + $0x70] sm:$0xff]   ;;  %v29_v25 = vlaneseq  ;;  %vm285_vm2 = vcmask 80896  }
  0x13   :  { %v364_v20 = vld [vmem:[%s506_s3 + $0x28] sm:$0xff]   ;;  %v366_v22 = vld [vmem:[%s506_s3 + $0x30] sm:$0xff]   ;;  %v367_v23 = vld [vmem:[%s506_s3 + $0x78] sm:$0xff]  }
  0x14   :  { %v368_v24 = vld [vmem:[%s506_s3 + $0x38] sm:$0xff]   ;;  %v30_v26 = vshrl.u32 %v29_v25, 7  ;;  %v27_v28 = vld [vmem:[%s505_s2] sm:$0x3]  ;;  %s394_s2 = smov [#allocation2]  }
  0x15   :  { %333 = vmatpush3.bf16.msra.mxu1 %v362_v18  ;;  %v307_v43 = vld [vmem:[%s507_s4] ss:$0 sm:$0xff]  ;;  %s293_s7 = sshll.u32 %s394_s2, 4  ;;  %s294_s7 = int_to_ptr.vmem [resolvable:$true] %s293_s7 }
  0x16   :  { %334 = vmatprep.subr.bf16.mxu1 %v363_v19  ;;  %v31_v27 = vsub.s32 0, %v30_v26  ;;  %v35_v29 = vsub.s32 1, %v30_v26  ;;  %s369_s8 = scalar_lea.vmem %s294_s7, 128  ;;  %p374_p1 = scmp.lt.s32.totalorder %s294_s7, %s294_s7 }
  0x17   :  { %p370_p0 = scmp.ne.s32.totalorder %s294_s7, %s369_s8  ;;  %p375_p2 = scmp.lt.s32.totalorder %s369_s8, %s369_s8 }
  0x18   :  { %v32_v30 = vrot.slane %v27_v28, %v31_v27  ;;  %v36_v31 = vrot.slane %v27_v28, %v35_v29 }
  0x19   :  { %335 = vmatpush3.bf16.msra.mxu1 %v364_v20  ;;  %p376_p3 = por %p375_p2, %p374_p1 }
  0x1a   :  { %336 = vmatprep.subr.bf16.mxu1 %v365_v21 }
  0x1b   :  { %p377_p4 = pnand %p376_p3, %p370_p0 }
  0x1d   :  { %337 = vmatpush3.bf16.msra.mxu1 %v366_v22 }
  0x1e   :  { %338 = vmatprep.subr.bf16.mxu1 %v367_v23 }
  0x21   :  { %339 = vmatpush3.bf16.msra.mxu1 %v368_v24 }
  0xdd   :  { %v99_v32 = vpop.f32.mrb[0].mxu0 }
  0xde   :  { %v100_v33 = vadd.f32 %v99_v32, %v32_v30  ;;  %v101_v34 = vpop.f32.mrb[1].mxu0 }
  0xdf   :  { %v102_v35 = vadd.f32 %v101_v34, %v36_v31  ;;  %v103_v36 = vpop.f32.mrb[2].mxu0 }
  0xe0   :  { %v106_v37 = vmax.f32 %v100_v33, 0.0  ;;  %v104_v38 = vpop.f32.mrb[3].mxu0 }
  0xe1   :  { %v107_v39 = vmax.f32 %v102_v35, 0.0 }
  0xe2   :  { %v108_v41 = vpack.c.bf16 %v106_v37, %v106_v37 }
  0xe3   :  { %v109_v40 = vpack.c.bf16 %v107_v39, %v107_v39 }
  0xe5   :  { %277 = vmatprep.mubr.bf16.mxu1 %v109_v40 }
  0xe6   :  { %278 = vmatmul.mubr.bf16.vlgmr.msra.gmra.mrb[0].mxu1 %v108_v41 }
 0x1b9   :  { %v340_v42 = vpop.f32.mrb[0].mxu1 }
 0x1ba   :  { %v341_v44 = vpop.f32.mrb[1].mxu1 }
 0x1bb   :  { %v342_v45 = vadd.f32 %v341_v44, %v340_v42  ;;  %v343_v46 = vpop.f32.mrb[2].mxu1 }
 0x1bc   :  { %v344_v47 = vpop.f32.mrb[3].mxu1 }
 0x1bd   :  { %v280_v48 = vadd.f32 %v342_v45, %v307_v43 }
 0x1bf   :  { %286 = vst.msk [vmem:[#allocation2] sm:$0xff] %vm285_vm2, %v280_v48 }
 0x1c0   :  { %380 = shalt.err (!%p377_p4)
}
 0x1c1   :  { %s381_s4 = scalar_lea.hbm %s508_s5, 128 }
 0x1c2   :  { %p382_p5 = scmp.ne.s32.totalorder %s508_s5, %s381_s4  ;;  %p385_p6 = scmp.lt.u32.totalorder %s381_s4, %s508_s5 }
 0x1c4   :  { %p387_p7 = pnand %p385_p6, %p382_p5 }
 0x1c6   :  { %390 = shalt.err (!%p387_p7)
}
 0x1c7   :  { %296 = dma.vmem_to_hbm [thread:$0]  %s294_s7, 128, %s508_s5, [#allocation3]  }
 0x1c8   :  { %391 = dma.done.wait [#allocation3], 128  }
 0x1c9   :  { %392 = vsyncadd [#allocation3], 4294967168 }
 0x1ca   :  { %300 = vsyncpa [#allocation3], 1 }

</bundles_post_ra>
